<compile_context>
chip_gen: v7x
topology: tpu7x:2x2x1
jax: 0.10.0
libtpu: 0.0.40
codegen_flags: <defaults>
</compile_context>

<pallas_src>
import functools

import numpy as np
import jax
import jax.numpy as jnp
from jax.experimental import pallas as pl
from jax.experimental.pallas import tpu as pltpu


# ----------------------------------------------------------------------------
# Parameter setup: deterministic numpy stand-in for
# nx.grid_2d_graph + sklearn SpectralEmbedding(affinity='precomputed').
# ----------------------------------------------------------------------------
def _grid_adjacency(n: int) -> np.ndarray:
    """Adjacency matrix of an n x n 2-D grid graph (same as nx.grid_2d_graph)."""
    N = n * n
    A = np.zeros((N, N), dtype=np.float64)

    def idx(i, j):
        return i * n + j

    for i in range(n):
        for j in range(n):
            if i + 1 < n:
                A[idx(i, j), idx(i + 1, j)] = 1.0
                A[idx(i + 1, j), idx(i, j)] = 1.0
            if j + 1 < n:
                A[idx(i, j), idx(i, j + 1)] = 1.0
                A[idx(i, j + 1), idx(i, j)] = 1.0
    return A


def _spectral_embedding(A: np.ndarray, n_components: int) -> np.ndarray:
    """Laplacian-eigenmaps embedding (deterministic stand-in for sklearn's
    SpectralEmbedding(affinity='precomputed').fit_transform(A))."""
    d = A.sum(axis=1)
    dd = 1.0 / np.sqrt(d)
    N = A.shape[0]
    L = np.eye(N) - dd[:, None] * A * dd[None, :]        # normalized Laplacian
    _, v = np.linalg.eigh(L)                             # ascending eigenvalues
    emb = v[:, : n_components + 1] * dd[:, None]         # random-walk eigenvectors
    emb = emb[:, 1 : n_components + 1]                   # drop constant eigenvector
    # deterministic sign flip (like sklearn's _deterministic_vector_sign_flip)
    max_rows = np.argmax(np.abs(emb), axis=0)
    signs = np.sign(emb[max_rows, np.arange(emb.shape[1])])
    signs[signs == 0] = 1.0
    return (emb * signs).astype(np.float32)


# ----------------------------------------------------------------------------
# Pallas kernels (operate on the lane-dense flattened layout (batch, L)).
# ----------------------------------------------------------------------------
def _add_pos_kernel(x_ref, emb_ref, o_ref):
    # x_ref: (batch, TL); emb_ref: (1, TL) -> broadcast add over batch.
    o_ref[...] = (x_ref[...] + emb_ref[...]).astype(o_ref.dtype)


def _add_pos_dropout_kernel(x_ref, emb_ref, bits_ref, o_ref, *, threshold, scale):
    # Signed-int32 threshold dropout: P(bits >= threshold) = 1 - p.
    y = x_ref[...] + emb_ref[...]
    keep = bits_ref[...] >= jnp.int32(threshold)
    y = y * jnp.where(keep, jnp.float32(scale), jnp.float32(0.0))
    o_ref[...] = y.astype(o_ref.dtype)


def _pick_lane_tile(L: int, batch: int, bytes_per_elem: int,
                    max_tile_bytes: int = 2 * 1024 * 1024) -> int:
    """Largest multiple of 128 dividing L with batch*tile*bytes <= cap.

    Keeps each double-buffered operand tile ~2 MiB so the full pipeline (x, emb,
    bits, out; 2 buffers each) stays well under the 32 MiB scoped-VMEM default
    on v5e/v6e/v7x. Falls back to the full dim (always a legal block extent)
    if no multiple-of-128 divisor fits.
    """
    cap_elems = max(128, max_tile_bytes // (bytes_per_elem * max(batch, 1)))
    best = None
    t = 128
    limit = min(L, cap_elems)
    while t <= limit:
        if L % t == 0:
            best = t
        t += 128
    return best if best is not None else L


def sklearn_spectral_embedding_forward(x, sorted_eigenvecs, key, *, p=0.1, training=True):
    """x: (batch, N, d_model); sorted_eigenvecs: (N, d_model); key: jax PRNG key."""
    batch, N, D = x.shape
    assert sorted_eigenvecs.shape == (N, D)
    L = N * D

    # Lane-dense layout: minor dim L (multiple of 128 for typical N, d_model)
    # instead of d_model=32, which would waste 3/4 of every vreg lane-width.
    x2 = x.reshape(batch, L)
    emb2 = sorted_eigenvecs.reshape(1, L).astype(x.dtype)

    itemsize = jnp.dtype(x.dtype).itemsize
    tl = _pick_lane_tile(L, batch, itemsize)
    grid_l = L // tl if L % tl == 0 else 1  # _pick_lane_tile guarantees divisibility or tl == L

    x_spec = pl.BlockSpec((batch, tl), lambda l: (0, l))
    emb_spec = pl.BlockSpec((1, tl), lambda l: (0, l))
    out_spec = pl.BlockSpec((batch, tl), lambda l: (0, l))

    common = dict(
        out_shape=jax.ShapeDtypeStruct((batch, L), x.dtype),
        compiler_params=pltpu.CompilerParams(
            dimension_semantics=("parallel",),      # lane-tile axis shards across TCs
            vmem_limit_bytes=32 * 1024 * 1024,
        ),
    )

    if training and p > 0.0:
        # TODO(synk): torch's dropout RNG stream cannot be reproduced bit-exactly;
        # an independent jax.random stream with the same keep-probability is used.
        bits_u32 = jax.random.bits(key, (batch, L), dtype=jnp.uint32)
        bits_i32 = jax.lax.bitcast_convert_type(bits_u32, jnp.int32)
        # keep iff int32 bits >= T, with T = p*2^32 - 2^31 so P(keep) = 1 - p.
        threshold = int(round(float(p) * 2.0 ** 32)) - 2 ** 31
        threshold = max(-(2 ** 31), min(threshold, 2 ** 31 - 1))
        scale = 1.0 / (1.0 - float(p))
        kernel = functools.partial(_add_pos_dropout_kernel, threshold=threshold, scale=scale)
        out2 = pl.pallas_call(
            kernel,
            grid_spec=pltpu.PrefetchScalarGridSpec(
                num_scalar_prefetch=0,
                grid=(grid_l,),
                in_specs=[x_spec, emb_spec, pl.BlockSpec((batch, tl), lambda l: (0, l))],
                out_specs=out_spec,
            ),
            **common,
        )(x2, emb2, bits_i32)
    else:
        out2 = pl.pallas_call(
            _add_pos_kernel,
            grid_spec=pltpu.PrefetchScalarGridSpec(
                num_scalar_prefetch=0,
                grid=(grid_l,),
                in_specs=[x_spec, emb_spec],
                out_specs=out_spec,
            ),
            **common,
        )(x2, emb2)

    return out2.reshape(batch, N, D)


if __name__ == "__main__":
    # Module hyperparameters (small, consistent with the forward's shapes).
    grid_size = 8          # -> N = 64 graph nodes (sequence length)
    d_model = 32
    batch = 2
    dropout_p = 0.1
    N = grid_size * grid_size

    # Deterministic "buffer" init (replaces the sklearn fit in __init__).
    A = _grid_adjacency(grid_size)
    sorted_eigenvecs = jnp.asarray(_spectral_embedding(A, d_model))  # (64, 32) f32

    key = jax.random.PRNGKey(0)
    x_key, drop_key = jax.random.split(key)
    x = jax.random.normal(x_key, (batch, N, d_model), dtype=jnp.float32)

    ref = np.asarray(x) + np.asarray(sorted_eigenvecs)[None]

    # Eval-mode check: dropout is identity, so out must equal x + embedding.
    y_eval = sklearn_spectral_embedding_forward(
        x, sorted_eigenvecs, drop_key, p=dropout_p, training=False
    )
    y_eval = jax.block_until_ready(y_eval)
    assert y_eval.shape == (batch, N, d_model)
    assert np.allclose(np.asarray(y_eval), ref, atol=1e-6), "eval-mode mismatch"

    # Train-mode check: kept elements scaled by 1/(1-p), dropped elements zero.
    y_train = sklearn_spectral_embedding_forward(
        x, sorted_eigenvecs, drop_key, p=dropout_p, training=True
    )
    y_train = jax.block_until_ready(y_train)
    assert y_train.shape == (batch, N, d_model)
    yt = np.asarray(y_train)
    kept = yt != 0.0
    assert np.allclose(yt[kept], ref[kept] / (1.0 - dropout_p), rtol=1e-5, atol=1e-5), \
        "train-mode kept-value mismatch"
    drop_frac = 1.0 - kept.mean()
    assert 0.0 <= drop_frac <= 0.35, f"dropout fraction suspicious: {drop_frac}"

    print("KERNEL_OK")
</pallas_src>

<mosaic_0001>
module attributes {stable_mosaic.version = 11 : i64} {
  func.func @_add_pos_kernel(%arg0: i32, %arg1: memref<2x2048xf32, #tpu.memory_space<vmem>>, %arg2: memref<1x2048xf32, #tpu.memory_space<vmem>>, %arg3: memref<2x2048xf32, #tpu.memory_space<vmem>>) attributes {dimension_semantics = [#tpu.dimension_semantics<parallel>], iteration_bounds = array<i64: 1>, scalar_prefetch = 0 : i64, scratch_operands = 0 : i64, tpu.core_type = #tpu.core_type<tc>, window_params = [{transform_indices = @transform_0, window_bounds = array<i64: 2, 2048>}, {transform_indices = @transform_1, window_bounds = array<i64: 1, 2048>}, {transform_indices = @transform_2, window_bounds = array<i64: 2, 2048>}]} {
    %c0 = arith.constant 0 : index
    %c0_0 = arith.constant 0 : index
    %0 = vector.load %arg1[%c0, %c0_0] : memref<2x2048xf32, #tpu.memory_space<vmem>>, vector<2x2048xf32>
    %c0_1 = arith.constant 0 : index
    %c0_2 = arith.constant 0 : index
    %1 = vector.load %arg2[%c0_1, %c0_2] : memref<1x2048xf32, #tpu.memory_space<vmem>>, vector<1x2048xf32>
    %2 = vector.broadcast %1 : vector<1x2048xf32> to vector<2x2048xf32>
    %3 = arith.addf %0, %2 : vector<2x2048xf32>
    %c0_3 = arith.constant 0 : index
    %c0_4 = arith.constant 0 : index
    %4 = vector.load %arg3[%c0_3, %c0_4] : memref<2x2048xf32, #tpu.memory_space<vmem>>, vector<2x2048xf32>
    tpu.vector_store %arg3[%c0_3, %c0_4], %3 {strides = array<i32>} : memref<2x2048xf32, #tpu.memory_space<vmem>>, vector<2x2048xf32>,
    return
  }
  func.func @transform_0(%arg0: i32) -> (i32, i32) {
    %c0_i32 = arith.constant 0 : i32
    %c0_i32_0 = arith.constant 0 : i32
    return %c0_i32, %arg0 : i32, i32
  }
  func.func @transform_1(%arg0: i32) -> (i32, i32) {
    %c0_i32 = arith.constant 0 : i32
    %c0_i32_0 = arith.constant 0 : i32
    return %c0_i32, %arg0 : i32, i32
  }
  func.func @transform_2(%arg0: i32) -> (i32, i32) {
    %c0_i32 = arith.constant 0 : i32
    %c0_i32_0 = arith.constant 0 : i32
    return %c0_i32, %arg0 : i32, i32
  }
}

</mosaic_0001>

<bundles_post_ra>
// kernel: tpu_custom_call.1
= control target key start
LH: loop header
LB: loop body
LE: loop exit
PB: predicated region body
PF: predicated region fallthrough
CT: control target
= control target key end

     0   :  { %7 = vsyncpa [#allocation3], 0  ;;  %s335_s0 = inlined_call_operand.hbm [shape: f32[2,2048], index: 0, kind: input, shape index: {}]   ;;  %s336_s1 = inlined_call_operand.hbm [shape: f32[1,2048], index: 1, kind: input, shape index: {}]   ;;  %s337_s2 = inlined_call_operand.hbm [shape: f32[2,2048], index: 2, kind: output, shape index: {}]  }
   0x1   :  { %8 = vsyncpa [#allocation6], 0 }
   0x2   :  { %9 = vsyncpa [#allocation4], 0  ;;  %s280_s9 = smov [#allocation2]   ;;  %s281_s11 = smov [#allocation5]  }
   0x3   :  { %s16_s10 = sshll.u32 %s280_s9, 4  ;;  %s26_s12 = sshll.u32 %s281_s11, 4  ;;  %s17_s10 = int_to_ptr.vmem [resolvable:$true] %s16_s10  ;;  %s27_s12 = int_to_ptr.vmem [resolvable:$true] %s26_s12 }
   0x4   :  { %s208_s15 = scalar_lea.hbm %s335_s0, 512 }
   0x5   :  { %p209_p0 = scmp.ne.s32.totalorder %s335_s0, %s208_s15  ;;  %p212_p1 = scmp.lt.u32.totalorder %s208_s15, %s335_s0 }
   0x7   :  { %p214_p2 = pnand %p212_p1, %p209_p0 }
   0x9   :  { %217 = shalt.err (!%p214_p2)
}
   0xa   :  { %s218_s20 = scalar_lea.vmem %s17_s10, 512  ;;  %p223_p4 = scmp.lt.s32.totalorder %s17_s10, %s17_s10 }
   0xb   :  { %p219_p3 = scmp.ne.s32.totalorder %s17_s10, %s218_s20  ;;  %p224_p5 = scmp.lt.s32.totalorder %s218_s20, %s218_s20 }
   0xd   :  { %p225_p6 = por %p224_p5, %p223_p4 }
   0xf   :  { %p226_p7 = pnand %p225_p6, %p219_p3 }
  0x11   :  { %229 = shalt.err (!%p226_p7)
}
  0x12   :  { %19 = dma.hbm_to_vmem [thread:$0]  %s335_s0, 512, %s17_s10, [#allocation3]  }
  0x13   :  { %s230_s25 = scalar_lea.hbm %s336_s1, 256 }
  0x14   :  { %p231_p8 = scmp.ne.s32.totalorder %s336_s1, %s230_s25  ;;  %p234_p9 = scmp.lt.u32.totalorder %s230_s25, %s336_s1 }
  0x16   :  { %p236_p10 = pnand %p234_p9, %p231_p8 }
  0x18   :  { %239 = shalt.err (!%p236_p10)
}
  0x19   :  { %s240_s30 = scalar_lea.vmem %s27_s12, 256  ;;  %p245_p12 = scmp.lt.s32.totalorder %s27_s12, %s27_s12 }
  0x1a   :  { %p241_p11 = scmp.ne.s32.totalorder %s27_s12, %s240_s30  ;;  %p246_p13 = scmp.lt.s32.totalorder %s240_s30, %s240_s30 }
  0x1c   :  { %p247_p0 = por %p246_p13, %p245_p12 }
  0x1e   :  { %p248_p1 = pnand %p247_p0, %p241_p11 }
  0x20   :  { %251 = shalt.err (!%p248_p1)
}
  0x21   :  { %29 = dma.hbm_to_vmem [thread:$0]  %s336_s1, 256, %s27_s12, [#allocation6]  }
  0x22   :  { %274 = dma.done.wait [#allocation3], 512  }
  0x23   :  { %275 = vsyncadd [#allocation3], 4294966784 }
  0x24   :  { %276 = dma.done.wait [#allocation6], 256  }
  0x25   :  { %277 = vsyncadd [#allocation6], 4294967040  ;;  %v44_v0 = vlaneseq  ;;  %v282_v1 = vmov 1983009808   ;;  %v40_v13 = vld [vmem:[#allocation5] sm:$0xff]  ;;  %v41_v19 = vld [vmem:[#allocation5 + $0x8] sm:$0xff] }
  0x26   :  { %v111_v2 = vunpack.c.l.s4 %v282_v1  ;;  %v36_v36 = vld [vmem:[#allocation2] sm:$0xff]  ;;  %v37_v42 = vld [vmem:[#allocation2 + $0x8] sm:$0xff]  ;;  %v38_v50 = vld [vmem:[#allocation2 + $0x10] sm:$0xff]  ;;  %s283_s1 = smov [#allocation7]  }
  0x27   :  { %v45_v3 = vshrl.u32 %v44_v0, 7  ;;  %v39_v57 = vld [vmem:[#allocation2 + $0x18] sm:$0xff]  ;;  %s194_s4 = sshll.u32 %s283_s1, 4  ;;  %s195_s4 = int_to_ptr.vmem [resolvable:$true] %s194_s4 }
  0x28   :  { %v112_v4 = vunpack.c.0.s8 %v111_v2  ;;  %s252_s5 = scalar_lea.vmem %s195_s4, 512  ;;  %p257_p3 = scmp.lt.s32.totalorder %s195_s4, %s195_s4 }
  0x29   :  { %v46_v5 = vsub.s32 0, %v45_v3  ;;  %v50_v6 = vsub.s32 1, %v45_v3  ;;  %v54_v7 = vsub.s32 2, %v45_v3  ;;  %v58_v8 = vsub.s32 3, %v45_v3  ;;  %p253_p2 = scmp.ne.s32.totalorder %s195_s4, %s252_s5  ;;  %p258_p4 = scmp.lt.s32.totalorder %s252_s5, %s252_s5 }
  0x2a   :  { %v62_v9 = vsub.s32 4, %v45_v3  ;;  %v66_v10 = vsub.s32 5, %v45_v3  ;;  %v70_v11 = vsub.s32 6, %v45_v3  ;;  %v74_v12 = vsub.s32 7, %v45_v3 }
  0x2b   :  { %v115_v14 = vsub.s32 %v112_v4, %v45_v3  ;;  %v47_v15 = vrot.slane %v40_v13, %v46_v5  ;;  %v51_v16 = vrot.slane %v40_v13, %v50_v6  ;;  %v55_v17 = vrot.slane %v40_v13, %v54_v7  ;;  %p259_p5 = por %p258_p4, %p257_p3 }
  0x2c   :  { %v59_v18 = vrot.slane %v40_v13, %v58_v8  ;;  %v63_v20 = vrot.slane %v40_v13, %v62_v9  ;;  %v67_v21 = vrot.slane %v40_v13, %v66_v10  ;;  %v71_v22 = vrot.slane %v40_v13, %v70_v11 }
  0x2d   :  { %v75_v23 = vrot.slane %v40_v13, %v74_v12  ;;  %v108_v24 = vcombine.low %v47_v15, %v51_v16  ;;  %v79_v26 = vrot.slane %v41_v19, %v46_v5  ;;  %v83_v27 = vrot.slane %v41_v19, %v50_v6  ;;  %p260_p6 = pnand %p259_p5, %p253_p2 }
  0x2e   :  { %v109_v25 = vcombine.low %v55_v17, %v59_v18  ;;  %v125_v28 = vcombine.low %v63_v20, %v67_v21  ;;  %v87_v30 = vrot.slane %v41_v19, %v54_v7  ;;  %v91_v31 = vrot.slane %v41_v19, %v58_v8 }
  0x2f   :  { %v126_v29 = vcombine.low %v71_v22, %v75_v23  ;;  %v116_v32 = vrot.slane %v108_v24, %v115_v14  ;;  %v142_v34 = vcombine.low %v79_v26, %v83_v27  ;;  %v95_v35 = vrot.slane %v41_v19, %v62_v9 }
  0x30   :  { %v123_v33 = vrot.slane %v109_v25, %v115_v14  ;;  %v133_v37 = vrot.slane %v125_v28, %v115_v14  ;;  %v143_v39 = vcombine.low %v87_v30, %v91_v31  ;;  %v99_v40 = vrot.slane %v41_v19, %v66_v10 }
  0x31   :  { %v140_v38 = vrot.slane %v126_v29, %v115_v14  ;;  %v150_v43 = vrot.slane %v142_v34, %v115_v14  ;;  %v103_v44 = vrot.slane %v41_v19, %v70_v11  ;;  %v107_v45 = vrot.slane %v41_v19, %v74_v12 }
  0x32   :  { %v124_v41 = vcombine.low %v116_v32, %v123_v33  ;;  %v157_v47 = vrot.slane %v143_v39, %v115_v14  ;;  %v159_v48 = vcombine.low %v95_v35, %v99_v40 }
  0x33   :  { %v141_v46 = vcombine.low %v133_v37, %v140_v38  ;;  %v160_v51 = vcombine.low %v103_v44, %v107_v45 }
  0x34   :  { %v180_v49 = vadd.f32 %v124_v41, %v36_v36  ;;  %v158_v53 = vcombine.low %v150_v43, %v157_v47  ;;  %v167_v54 = vrot.slane %v159_v48, %v115_v14 }
  0x35   :  { %v181_v52 = vadd.f32 %v141_v46, %v37_v42  ;;  %v174_v55 = vrot.slane %v160_v51, %v115_v14 }
  0x36   :  { %184 = vst [vmem:[#allocation7] sm:$0xff] %v180_v49  ;;  %v182_v56 = vadd.f32 %v158_v53, %v38_v50 }
  0x37   :  { %185 = vst [vmem:[#allocation7 + $0x8] sm:$0xff] %v181_v52  ;;  %v175_v58 = vcombine.low %v167_v54, %v174_v55 }
  0x38   :  { %186 = vst [vmem:[#allocation7 + $0x10] sm:$0xff] %v182_v56 }
  0x39   :  { %v183_v59 = vadd.f32 %v175_v58, %v39_v57 }
  0x3b   :  { %187 = vst [vmem:[#allocation7 + $0x18] sm:$0xff] %v183_v59 }
  0x3c   :  { %263 = shalt.err (!%p260_p6)
}
  0x3d   :  { %s264_s8 = scalar_lea.hbm %s337_s2, 512 }
  0x3e   :  { %p265_p7 = scmp.ne.s32.totalorder %s337_s2, %s264_s8  ;;  %p268_p8 = scmp.lt.u32.totalorder %s264_s8, %s337_s2 }
  0x40   :  { %p270_p9 = pnand %p268_p8, %p265_p7 }
  0x42   :  { %273 = shalt.err (!%p270_p9)
}
  0x43   :  { %197 = dma.vmem_to_hbm [thread:$0]  %s195_s4, 512, %s337_s2, [#allocation4]  }
  0x44   :  { %278 = dma.done.wait [#allocation4], 512  }
  0x45   :  { %279 = vsyncadd [#allocation4], 4294966784 }
  0x46   :  { %201 = vsyncpa [#allocation3], 1 }
  0x47   :  { %202 = vsyncpa [#allocation6], 1 }
  0x48   :  { %203 = vsyncpa [#allocation4], 1 }

</bundles_post_ra>
